<compile_context>
chip_gen: v7x
topology: tpu7x:2x2x1
jax: 0.10.0
libtpu: 0.0.40
codegen_flags: <defaults>
</compile_context>

<pallas_src>
import functools

import jax
import jax.numpy as jnp
from jax.experimental import pallas as pl
from jax.experimental.pallas import tpu as pltpu


def _mir_kernel(x_ref, wenc_ref, benc_ref, wc_ref, bc_ref, o_ref):
    # x_ref:    [TM, D]    input rows (native dtype; cast to f32 in-kernel)
    # wenc_ref: [D, 2H]    fused [We || Ws]
    # benc_ref: [1, 2H]    fused [be || bs]
    # wc_ref:   [1, 2H]    classifier weight (transposed; O == 1)
    # bc_ref:   [1, 1]     classifier bias
    # o_ref:    [1, TM]    lane-dense output row for this tile
    y = x_ref[...].astype(jnp.float32)

    # Both encoders in a single MXU matmul + bias + ReLU.
    h = jnp.dot(y, wenc_ref[...], preferred_element_type=jnp.float32) + benc_ref[...]
    h = jnp.maximum(h, 0.0)                                  # [TM, 2H]

    # Classifier (O == 1): VPU multiply + cross-lane reduce instead of a 1-wide matmul.
    logits = jnp.sum(h * wc_ref[...], axis=-1)               # [TM]
    o_ref[...] = jax.nn.sigmoid(logits[None, :] + bc_ref[...])


@functools.partial(jax.jit, static_argnames=("tm",))
def multi_ion_readout(x, we, be, ws, bs, wc, bc, *, tm=512):
    """x: [batch, n_ions, H, W] -> per-ion probabilities [batch, n_ions, 1]."""
    lead = x.shape[:-2]
    D = x.shape[-2] * x.shape[-1]
    x2d = x.reshape(-1, D)                      # keep native dtype; cast in-kernel
    M = x2d.shape[0]
    H = we.shape[1]
    O = wc.shape[1]
    # TODO(synk): kernel is specialized to the O==1 bright/dark classifier (VPU
    # reduce + lane-dense output); a general-O head would fall back to an MXU matmul.
    assert O == 1, "fused kernel implements the O == 1 (bright/dark) classifier"
    assert tm % 128 == 0, "row tile must be a multiple of 128 (lane-dense output)"

    # Clamp the tile to the 128-aligned batch so small batches run a single small tile.
    m_aligned = ((M + 127) // 128) * 128
    tm = max(128, min(tm, m_aligned))

    # Fuse the two encoders: one [D, 2H] weight, one [1, 2H] bias -> no concat in-kernel.
    w_enc = jnp.concatenate([we, ws], axis=1)                # [D, 2H]
    b_enc = jnp.concatenate([be, bs], axis=1)                # [1, 2H]
    wc_row = wc.T                                            # [1, 2H]

    num_tiles = pl.cdiv(M, tm)
    m_pad = num_tiles * tm
    # No jnp.pad of x: the boundary tile's extra rows are handled by Pallas'
    # partial-block DMA; their (unspecified) results land in out[:, M:] which is
    # sliced off below.  Output writes stay fully in-bounds (unmasked stores).

    out = pl.pallas_call(
        _mir_kernel,
        out_shape=jax.ShapeDtypeStruct((1, m_pad), jnp.float32),
        grid_spec=pltpu.PrefetchScalarGridSpec(
            num_scalar_prefetch=0,
            grid=(num_tiles,),
            in_specs=[
                pl.BlockSpec((tm, D), lambda i: (i, 0)),       # x rows (tiled over M)
                pl.BlockSpec((D, 2 * H), lambda i: (0, 0)),    # [We || Ws] (resident)
                pl.BlockSpec((1, 2 * H), lambda i: (0, 0)),    # [be || bs]
                pl.BlockSpec((1, 2 * H), lambda i: (0, 0)),    # Wc^T
                pl.BlockSpec((1, 1), lambda i: (0, 0)),        # bc
            ],
            out_specs=pl.BlockSpec((1, tm), lambda i: (0, i)), # lane-dense output slab
        ),
        compiler_params=pltpu.CompilerParams(
            dimension_semantics=("parallel",)),                # megacore-shardable rows
    )(x2d, w_enc, b_enc, wc_row, bc)

    return out[0, :M].reshape(*lead, O)


def _reference(x, we, be, ws, bs, wc, bc):
    lead = x.shape[:-2]
    y = x.reshape(*lead, -1).astype(jnp.float32)
    y1 = jnp.maximum(y @ we + be[0], 0.0)
    y2 = jnp.maximum(y @ ws + bs[0], 0.0)
    yc = jnp.concatenate([y1, y2], axis=-1)
    return jax.nn.sigmoid(yc @ wc + bc[0])


if __name__ == "__main__":
    # Small shapes consistent with the forward: n_ions per shot, 16x16 image crops.
    img_h, img_w = 16, 16
    D = img_h * img_w          # 256 flattened pixels per ion
    H = 32                     # encoder hidden width
    O = 1                      # per-ion bright/dark probability (sigmoid -> BCE-ready)

    key = jax.random.PRNGKey(0)
    kx, kx2, k1, k2, k3, k4, k5, k6 = jax.random.split(key, 8)

    # Deterministic synthetic parameters ([in, out] layout).
    we = jax.random.normal(k1, (D, H), dtype=jnp.float32) * 0.05
    be = jax.random.normal(k2, (1, H), dtype=jnp.float32) * 0.05
    ws = jax.random.normal(k3, (D, H), dtype=jnp.float32) * 0.05
    bs = jax.random.normal(k4, (1, H), dtype=jnp.float32) * 0.05
    wc = jax.random.normal(k5, (2 * H, O), dtype=jnp.float32) * 0.05
    bc = jax.random.normal(k6, (1, O), dtype=jnp.float32) * 0.05

    # Case 1: tiny batch (M=8 rows) -> tile auto-clamped to 128, single boundary tile.
    x = jax.random.normal(kx, (2, 4, img_h, img_w), dtype=jnp.float32)
    out = jax.block_until_ready(multi_ion_readout(x, we, be, ws, bs, wc, bc))
    ref = _reference(x, we, be, ws, bs, wc, bc)
    assert out.shape == (2, 4, O), out.shape
    assert jnp.allclose(out, ref, atol=1e-5, rtol=1e-5), "mismatch (case 1)"

    # Case 2: M=320 rows with tm=128 -> multi-tile grid + non-divisible boundary tile.
    x2 = jax.random.normal(kx2, (80, 4, img_h, img_w), dtype=jnp.float32)
    out2 = jax.block_until_ready(multi_ion_readout(x2, we, be, ws, bs, wc, bc, tm=128))
    ref2 = _reference(x2, we, be, ws, bs, wc, bc)
    assert out2.shape == (80, 4, O), out2.shape
    assert jnp.allclose(out2, ref2, atol=1e-5, rtol=1e-5), "mismatch (case 2)"

    # Case 3: default tile path (tm clamped to 384 for M=320), single tile.
    out3 = jax.block_until_ready(multi_ion_readout(x2, we, be, ws, bs, wc, bc))
    assert jnp.allclose(out3, ref2, atol=1e-5, rtol=1e-5), "mismatch (case 3)"

    print("KERNEL_OK")
</pallas_src>

<mosaic_0001>
module attributes {stable_mosaic.version = 11 : i64} {
  func.func @_mir_kernel(%arg0: i32, %arg1: memref<128x256xf32, #tpu.memory_space<vmem>>, %arg2: memref<256x64xf32, #tpu.memory_space<vmem>>, %arg3: memref<1x64xf32, #tpu.memory_space<vmem>>, %arg4: memref<1x64xf32, #tpu.memory_space<vmem>>, %arg5: memref<1x1xf32, #tpu.memory_space<vmem>>, %arg6: memref<1x128xf32, #tpu.memory_space<vmem>>) attributes {dimension_semantics = [#tpu.dimension_semantics<parallel>], iteration_bounds = array<i64: 1>, scalar_prefetch = 0 : i64, scratch_operands = 0 : i64, tpu.core_type = #tpu.core_type<tc>, window_params = [{transform_indices = @transform_0, window_bounds = array<i64: 128, 256>}, {pipeline_mode = #tpu.pipeline_mode<synchronous>, transform_indices = @transform_1, window_bounds = array<i64: 256, 64>}, {pipeline_mode = #tpu.pipeline_mode<synchronous>, transform_indices = @transform_2, window_bounds = array<i64: 1, 64>}, {pipeline_mode = #tpu.pipeline_mode<synchronous>, transform_indices = @transform_3, window_bounds = array<i64: 1, 64>}, {pipeline_mode = #tpu.pipeline_mode<synchronous>, transform_indices = @transform_4, window_bounds = array<i64: 1, 1>}, {transform_indices = @transform_5, window_bounds = array<i64: 1, 128>}]} {
    %c0 = arith.constant 0 : index
    %c0_0 = arith.constant 0 : index
    %0 = vector.load %arg1[%c0, %c0_0] : memref<128x256xf32, #tpu.memory_space<vmem>>, vector<128x256xf32>
    %c0_1 = arith.constant 0 : index
    %c0_2 = arith.constant 0 : index
    %1 = vector.load %arg2[%c0_1, %c0_2] : memref<256x64xf32, #tpu.memory_space<vmem>>, vector<256x64xf32>
    %cst = arith.constant dense<0.000000e+00> : vector<128x64xf32>
    %2 = tpu.matmul %0, %1, %cst {dimension_numbers = #tpu.dot_dimension_numbers<[1], [0], [0], [1], [0, 0, 1, 1], [], []>} : vector<128x256xf32>, vector<256x64xf32>, vector<128x64xf32> -> vector<128x64xf32>
    %c0_3 = arith.constant 0 : index
    %c0_4 = arith.constant 0 : index
    %3 = vector.load %arg3[%c0_3, %c0_4] : memref<1x64xf32, #tpu.memory_space<vmem>>, vector<1x64xf32>
    %4 = vector.broadcast %3 : vector<1x64xf32> to vector<128x64xf32>
    %5 = arith.addf %2, %4 : vector<128x64xf32>
    %cst_5 = arith.constant 0.000000e+00 : f32
    %6 = vector.broadcast %cst_5 : f32 to vector<128x64xf32>
    %7 = arith.maximumf %5, %6 : vector<128x64xf32>
    %c0_6 = arith.constant 0 : index
    %c0_7 = arith.constant 0 : index
    %8 = vector.load %arg4[%c0_6, %c0_7] : memref<1x64xf32, #tpu.memory_space<vmem>>, vector<1x64xf32>
    %9 = vector.broadcast %8 : vector<1x64xf32> to vector<128x64xf32>
    %10 = arith.mulf %7, %9 : vector<128x64xf32>
    %cst_8 = arith.constant dense<0.000000e+00> : vector<128xf32>
    %11 = vector.multi_reduction <add>, %10, %cst_8 [1] : vector<128x64xf32> to vector<128xf32>
    %12 = vector.shape_cast %11 : vector<128xf32> to vector<1x128xf32>
    %c0_9 = arith.constant 0 : index
    %c0_10 = arith.constant 0 : index
    %13 = vector.load %arg5[%c0_9, %c0_10] : memref<1x1xf32, #tpu.memory_space<vmem>>, vector<1x1xf32>
    %14 = vector.broadcast %13 : vector<1x1xf32> to vector<1x128xf32>
    %15 = arith.addf %12, %14 : vector<1x128xf32>
    %16 = arith.negf %15 : vector<1x128xf32>
    %17 = math.exp %16 : vector<1x128xf32>
    %cst_11 = arith.constant 1.000000e+00 : f32
    %18 = vector.broadcast %cst_11 : f32 to vector<1x128xf32>
    %19 = arith.addf %18, %17 : vector<1x128xf32>
    %20 = arith.divf %18, %19 : vector<1x128xf32>
    %c0_12 = arith.constant 0 : index
    %c0_13 = arith.constant 0 : index
    %21 = vector.load %arg6[%c0_12, %c0_13] : memref<1x128xf32, #tpu.memory_space<vmem>>, vector<1x128xf32>
    tpu.vector_store %arg6[%c0_12, %c0_13], %20 {strides = array<i32>} : memref<1x128xf32, #tpu.memory_space<vmem>>, vector<1x128xf32>,
    return
  }
  func.func @transform_0(%arg0: i32) -> (i32, i32) {
    %c0_i32 = arith.constant 0 : i32
    %c0_i32_0 = arith.constant 0 : i32
    return %arg0, %c0_i32 : i32, i32
  }
  func.func @transform_1(%arg0: i32) -> (i32, i32) {
    %c0_i32 = arith.constant 0 : i32
    %c0_i32_0 = arith.constant 0 : i32
    %c0_i32_1 = arith.constant 0 : i32
    return %c0_i32, %c0_i32_0 : i32, i32
  }
  func.func @transform_2(%arg0: i32) -> (i32, i32) {
    %c0_i32 = arith.constant 0 : i32
    %c0_i32_0 = arith.constant 0 : i32
    %c0_i32_1 = arith.constant 0 : i32
    return %c0_i32, %c0_i32_0 : i32, i32
  }
  func.func @transform_3(%arg0: i32) -> (i32, i32) {
    %c0_i32 = arith.constant 0 : i32
    %c0_i32_0 = arith.constant 0 : i32
    %c0_i32_1 = arith.constant 0 : i32
    return %c0_i32, %c0_i32_0 : i32, i32
  }
  func.func @transform_4(%arg0: i32) -> (i32, i32) {
    %c0_i32 = arith.constant 0 : i32
    %c0_i32_0 = arith.constant 0 : i32
    %c0_i32_1 = arith.constant 0 : i32
    return %c0_i32, %c0_i32_0 : i32, i32
  }
  func.func @transform_5(%arg0: i32) -> (i32, i32) {
    %c0_i32 = arith.constant 0 : i32
    %c0_i32_0 = arith.constant 0 : i32
    return %c0_i32, %arg0 : i32, i32
  }
}

</mosaic_0001>

<bundles_post_ra>
// kernel: squeeze.1
= control target key start
LH: loop header
LB: loop body
LE: loop exit
PB: predicated region body
PF: predicated region fallthrough
CT: control target
= control target key end

     0   :  { %s85_s0 = inlined_call_operand.vmem [shape: f32[8], index: 0, kind: input, shape index: {}]   ;;  %s86_s1 = inlined_call_operand.hbm [shape: f32[2,4,1], index: 1, kind: output, shape index: {}]  }
   0x1   :  { %v5_v0 = vld [vmem:[%s85_s0] sm:$0x1] }
   0x2   :  { %2 = vsyncpa [#allocation1], 0  ;;  %6 = vst [vmem:[#allocation3] sm:$0x1] %v5_v0  ;;  %vm8_vm0 = vcmask 31744   ;;  %s58_s0 = smov 124  }
   0x3   :  { %s59_s8 = smov [#allocation0]  }
   0x4   :  { %s26_s9 = sshll.u32 %s59_s8, 4  ;;  %s27_s9 = int_to_ptr.vmem [resolvable:$true] %s26_s9 }
   0x5   :  { %s34_s10 = scalar_lea.vmem %s27_s9, 32  ;;  %p39_p1 = scmp.lt.s32.totalorder %s27_s9, %s27_s9 }
   0x6   :  { %p35_p0 = scmp.ne.s32.totalorder %s27_s9, %s34_s10  ;;  %p40_p2 = scmp.lt.s32.totalorder %s34_s10, %s34_s10 }
   0x8   :  { %p41_p3 = por %p40_p2, %p39_p1 }
   0x9   :  { %v10_v1 = vld [vmem:[#allocation3] sm:$0x1]  }
   0xa   :  { %v7_v2 = vld [vmem:[#allocation3] sm:$0x1]   ;;  %11 = vrot.lane.b32.xlu0 %v10_v1, %s58_s0  ;;  %p42_p4 = pnand %p41_p3, %p35_p0 }
   0xb   :  { %9 = vst.msk [vmem:[#allocation2] sm:$0x1] %vm8_vm0, %v7_v2  }
  0x7c   :  { %v12_v3 = vpop.permute.xlu0 %11  }
  0x7d   :  { %15 = vst.msk [vmem:[#allocation2 + $0x1] sm:$0x1] %vm8_vm0, %v12_v3  }
  0x84   :  { %v19_v4 = vld [vmem:[#allocation2] sm:$0x3] }
  0x85   :  { %21 = vst [vmem:[#allocation0] sm:$0x3] %v19_v4 }
  0x86   :  { %45 = shalt.err (!%p42_p4)
}
  0x87   :  { %s46_s13 = scalar_lea.hbm %s86_s1, 32 }
  0x88   :  { %p47_p5 = scmp.ne.s32.totalorder %s86_s1, %s46_s13  ;;  %p50_p6 = scmp.lt.u32.totalorder %s46_s13, %s86_s1 }
  0x8a   :  { %p52_p7 = pnand %p50_p6, %p47_p5 }
  0x8c   :  { %55 = shalt.err (!%p52_p7)
}
  0x8d   :  { %29 = dma.vmem_to_hbm [thread:$0]  %s27_s9, 32, %s86_s1, [#allocation1]  }
  0x8e   :  { %56 = dma.done.wait [#allocation1], 32  }
  0x8f   :  { %57 = vsyncadd [#allocation1], 4294967264 }
  0x90   :  { %31 = vsyncpa [#allocation1], 1 }

// kernel: multi_ion_readout.1
= control target key start
LH: loop header
LB: loop body
LE: loop exit
PB: predicated region body
PF: predicated region fallthrough
CT: control target
= control target key end

     0   :  { %vm277_vm0 = vcmask 523264   ;;  %vm475_vm1 = vcmask 130112   ;;  %vm482_vm2 = vcmask 195712   ;;  %vm489_vm3 = vcmask 261312   ;;  %s1139_s1 = inlined_call_operand.vmem [shape: f32[256,64], index: 1, kind: input, shape index: {}]   ;;  %s1140_s0 = inlined_call_operand.vmem [shape: f32[8,256], index: 0, kind: input, shape index: {}]   ;;  %s1141_s4 = inlined_call_operand.<no memory space> [shape: f32[1,1], index: 4, kind: input, shape index: {}]   ;;  %s1142_s2 = inlined_call_operand.vmem [shape: f32[1,64], index: 2, kind: input, shape index: {}]   ;;  %s1143_s3 = inlined_call_operand.vmem [shape: f32[1,64], index: 3, kind: input, shape index: {}]   ;;  %s1144_s5 = inlined_call_operand.vmem [shape: f32[1,128], index: 5, kind: output, shape index: {}]  }
   0x1   :  { %v70_v0 = vld [vmem:[%s1139_s1 + $0x80] sm:$0xff]  ;;  %v71_v1 = vld [vmem:[%s1139_s1 + $0x88] sm:$0xff]  ;;  %v72_v5 = vld [vmem:[%s1139_s1 + $0x90] sm:$0xff]  ;;  %vm496_vm4 = vcmask 326912   ;;  %vm503_vm5 = vcmask 392512   ;;  %vm510_vm6 = vcmask 458112  }
   0x2   :  { %v54_v2 = vld [vmem:[%s1139_s1] sm:$0xff]  ;;  %v679_v3 = vpack.c.bf16 %v71_v1, %v70_v0  ;;  %v55_v4 = vld [vmem:[%s1139_s1 + $0x8] sm:$0xff]  ;;  %v73_v6 = vld [vmem:[%s1139_s1 + $0x98] sm:$0xff]  ;;  %vm517_vm7 = vcmask 523712   ;;  %vm524_vm8 = vcmask 589312   ;;  %vm531_vm9 = vcmask 654912  }
   0x3   :  { %v681_v7 = vpack.c.bf16 %v55_v4, %v54_v2  ;;  %v683_v8 = vpack.c.bf16 %v73_v6, %v72_v5  ;;  %v56_v9 = vld [vmem:[%s1139_s1 + $0x10] sm:$0xff]  ;;  %v57_v10 = vld [vmem:[%s1139_s1 + $0x18] sm:$0xff]  ;;  %v74_v11 = vld [vmem:[%s1139_s1 + $0xa0] sm:$0xff]  ;;  %vm538_vm10 = vcmask 720512   ;;  %vm545_vm11 = vcmask 786112  }
   0x4   :  { %680 = vmatprep.subr.bf16.mxu0 %v679_v3  ;;  %v75_v12 = vld [vmem:[%s1139_s1 + $0xa8] sm:$0xff]  ;;  %711 = vmatprep.subr.bf16.mxu1 %v679_v3  ;;  %v685_v13 = vpack.c.bf16 %v57_v10, %v56_v9  ;;  %v58_v15 = vld [vmem:[%s1139_s1 + $0x20] sm:$0xff]  ;;  %v76_v17 = vld [vmem:[%s1139_s1 + $0xb0] sm:$0xff]  ;;  %vm552_vm12 = vcmask 851712   ;;  %vm559_vm13 = vcmask 917312   ;;  %vm566_vm14 = vcmask 982912  }
   0x5   :  { %682 = vmatpush3.bf16.msra.mxu0 %v681_v7  ;;  %719 = vmatpush3.bf16.msra.mxu1 %v681_v7  ;;  %v687_v14 = vpack.c.bf16 %v75_v12, %v74_v11  ;;  %v59_v16 = vld [vmem:[%s1139_s1 + $0x28] sm:$0xff]  ;;  %v77_v18 = vld [vmem:[%s1139_s1 + $0xb8] sm:$0xff]  ;;  %v60_v21 = vld [vmem:[%s1139_s1 + $0x30] sm:$0xff]  ;;  %vm573_vm15 = vcmask 1048512  }
   0x6   :  { %684 = vmatprep.subr.bf16.mxu0 %v683_v8  ;;  %712 = vmatprep.subr.bf16.mxu1 %v683_v8  ;;  %v689_v19 = vpack.c.bf16 %v59_v16, %v58_v15  ;;  %v691_v20 = vpack.c.bf16 %v77_v18, %v76_v17  ;;  %v61_v22 = vld [vmem:[%s1139_s1 + $0x38] sm:$0xff]  ;;  %v78_v23 = vld [vmem:[%s1139_s1 + $0xc0] sm:$0xff]  ;;  %v79_v24 = vld [vmem:[%s1139_s1 + $0xc8] sm:$0xff]  ;;  %v10_v16 = vstv %s1141_s4  ;;  %v794_v17 = vmov 0  }
   0x7   :  { %v23_v25 = vld [vmem:[%s1140_s0 + $0x8] sm:$0xff]  ;;  %v693_v26 = vpack.c.bf16 %v61_v22, %v60_v21  ;;  %v695_v27 = vpack.c.bf16 %v79_v24, %v78_v23  ;;  %v62_v28 = vld [vmem:[%s1139_s1 + $0x40] sm:$0xff]  ;;  %v80_v31 = vld [vmem:[%s1139_s1 + $0xd0] sm:$0xff]  ;;  %11 = vst [vmem:[#allocation2] sm:$0x1] %v10_v16  ;;  %728 = vset.pattern.permute.xlu1 %v794_v17  ;;  %729 = vset.pattern.permute.xlu0 %v794_v17 }
   0x8   :  { %157 = vmatprep.mubr.f32.mxu0 %v23_v25  ;;  %v63_v29 = vld [vmem:[%s1139_s1 + $0x48] sm:$0xff]  ;;  %v81_v32 = vld [vmem:[%s1139_s1 + $0xd8] sm:$0xff]  ;;  %v64_v35 = vld [vmem:[%s1139_s1 + $0x50] sm:$0xff] }
   0x9   :  { %686 = vmatpush3.bf16.msra.mxu0 %v685_v13  ;;  %720 = vmatpush3.bf16.msra.mxu1 %v685_v13  ;;  %v39_v30 = vld [vmem:[%s1140_s0 + $0x88] sm:$0xff]  ;;  %v697_v33 = vpack.c.bf16 %v63_v29, %v62_v28  ;;  %v699_v34 = vpack.c.bf16 %v81_v32, %v80_v31  ;;  %v65_v36 = vld [vmem:[%s1139_s1 + $0x58] sm:$0xff]  ;;  %v82_v37 = vld [vmem:[%s1139_s1 + $0xe0] sm:$0xff] }
   0xa   :  { %688 = vmatprep.subr.bf16.mxu0 %v687_v14  ;;  %713 = vmatprep.subr.bf16.mxu1 %v687_v14  ;;  %v83_v38 = vld [vmem:[%s1139_s1 + $0xe8] sm:$0xff]  ;;  %v701_v39 = vpack.c.bf16 %v65_v36, %v64_v35  ;;  %v66_v41 = vld [vmem:[%s1139_s1 + $0x60] sm:$0xff]  ;;  %v84_v43 = vld [vmem:[%s1139_s1 + $0xf0] sm:$0xff] }
   0xb   :  { %197 = vmatprep.mubr.f32.mxu1 %v39_v30  ;;  %v703_v40 = vpack.c.bf16 %v83_v38, %v82_v37  ;;  %v67_v42 = vld [vmem:[%s1139_s1 + $0x68] sm:$0xff]  ;;  %v85_v44 = vld [vmem:[%s1139_s1 + $0xf8] sm:$0xff]  ;;  %v68_v47 = vld [vmem:[%s1139_s1 + $0x70] sm:$0xff] }
   0xc   :  { %v705_v45 = vpack.c.bf16 %v67_v42, %v66_v41  ;;  %v707_v46 = vpack.c.bf16 %v85_v44, %v84_v43  ;;  %v69_v48 = vld [vmem:[%s1139_s1 + $0x78] sm:$0xff]  ;;  %v22_v50 = vld [vmem:[%s1140_s0] sm:$0xff]  ;;  %v24_v54 = vld [vmem:[%s1140_s0 + $0x10] sm:$0xff] }
   0xd   :  { %690 = vmatpush3.bf16.msra.mxu0 %v689_v19  ;;  %721 = vmatpush3.bf16.msra.mxu1 %v689_v19  ;;  %v709_v49 = vpack.c.bf16 %v69_v48, %v68_v47  ;;  %v38_v51 = vld [vmem:[%s1140_s0 + $0x80] sm:$0xff]  ;;  %v25_v52 = vld [vmem:[%s1140_s0 + $0x18] sm:$0xff]  ;;  %v40_v55 = vld [vmem:[%s1140_s0 + $0x90] sm:$0xff] }
   0xe   :  { %692 = vmatprep.subr.bf16.mxu0 %v691_v20  ;;  %714 = vmatprep.subr.bf16.mxu1 %v691_v20  ;;  %v41_v53 = vld [vmem:[%s1140_s0 + $0x98] sm:$0xff]  ;;  %v27_v56 = vld [vmem:[%s1140_s0 + $0x28] sm:$0xff]  ;;  %v26_v58 = vld [vmem:[%s1140_s0 + $0x20] sm:$0xff] }
   0xf   :  { %v43_v57 = vld [vmem:[%s1140_s0 + $0xa8] sm:$0xff]  ;;  %v42_v59 = vld [vmem:[%s1140_s0 + $0xa0] sm:$0xff]  ;;  %v29_v60 = vld [vmem:[%s1140_s0 + $0x38] sm:$0xff] }
  0x10   :  { %v45_v61 = vld [vmem:[%s1140_s0 + $0xb8] sm:$0xff]  ;;  %v28_v62 = vld [vmem:[%s1140_s0 + $0x30] sm:$0xff]  ;;  %v31_v0 = vld [vmem:[%s1140_s0 + $0x48] sm:$0xff] }
  0x11   :  { %694 = vmatpush3.bf16.msra.mxu0 %v693_v26  ;;  %722 = vmatpush3.bf16.msra.mxu1 %v693_v26  ;;  %v44_v63 = vld [vmem:[%s1140_s0 + $0xb0] sm:$0xff]  ;;  %v47_v1 = vld [vmem:[%s1140_s0 + $0xc8] sm:$0xff]  ;;  %v30_v2 = vld [vmem:[%s1140_s0 + $0x40] sm:$0xff] }
  0x12   :  { %696 = vmatprep.subr.bf16.mxu0 %v695_v27  ;;  %715 = vmatprep.subr.bf16.mxu1 %v695_v27  ;;  %v46_v3 = vld [vmem:[%s1140_s0 + $0xc0] sm:$0xff]  ;;  %v33_v4 = vld [vmem:[%s1140_s0 + $0x58] sm:$0xff]  ;;  %v32_v6 = vld [vmem:[%s1140_s0 + $0x50] sm:$0xff] }
  0x13   :  { %v49_v5 = vld [vmem:[%s1140_s0 + $0xd8] sm:$0xff]  ;;  %v48_v7 = vld [vmem:[%s1140_s0 + $0xd0] sm:$0xff]  ;;  %v35_v8 = vld [vmem:[%s1140_s0 + $0x68] sm:$0xff] }
  0x14   :  { %v51_v9 = vld [vmem:[%s1140_s0 + $0xe8] sm:$0xff]  ;;  %v34_v10 = vld [vmem:[%s1140_s0 + $0x60] sm:$0xff]  ;;  %v37_v12 = vld [vmem:[%s1140_s0 + $0x78] sm:$0xff] }
  0x15   :  { %698 = vmatpush3.bf16.msra.mxu0 %v697_v33  ;;  %723 = vmatpush3.bf16.msra.mxu1 %v697_v33  ;;  %v50_v11 = vld [vmem:[%s1140_s0 + $0xe0] sm:$0xff]  ;;  %v53_v13 = vld [vmem:[%s1140_s0 + $0xf8] sm:$0xff]  ;;  %v36_v14 = vld [vmem:[%s1140_s0 + $0x70] sm:$0xff] }
  0x16   :  { %700 = vmatprep.subr.bf16.mxu0 %v699_v34  ;;  %716 = vmatprep.subr.bf16.mxu1 %v699_v34  ;;  %v52_v15 = vld [vmem:[%s1140_s0 + $0xf0] sm:$0xff]  ;;  %v1023_v20 = vld [vmem:[%s1142_s2] ss:$0 sm:$0xff] }
  0x17   :  { %v1029_v29 = vld [vmem:[%s1143_s3] ss:$0 sm:$0xff] }
  0x19   :  { %702 = vmatpush3.bf16.msra.mxu0 %v701_v39  ;;  %724 = vmatpush3.bf16.msra.mxu1 %v701_v39 }
  0x1a   :  { %704 = vmatprep.subr.bf16.mxu0 %v703_v40  ;;  %717 = vmatprep.subr.bf16.mxu1 %v703_v40 }
  0x1d   :  { %706 = vmatpush3.bf16.msra.mxu0 %v705_v45  ;;  %725 = vmatpush3.bf16.msra.mxu1 %v705_v45 }
  0x1e   :  { %708 = vmatprep.subr.bf16.mxu0 %v707_v46  ;;  %718 = vmatprep.subr.bf16.mxu1 %v707_v46 }
  0x21   :  { %710 = vmatpush3.bf16.msra.mxu0 %v709_v49  ;;  %726 = vmatpush3.bf16.msra.mxu1 %v709_v49 }
  0x24   :  { %158 = vmatmul.mubr.f32.vlgmr.msra.gmra.mrb[0].mxu0 %v22_v50  ;;  %198 = vmatmul.mubr.f32.vlgmr.msra.gmra.mrb[0].mxu1 %v38_v51 }
  0x25   :  { %162 = vmatprep.mubr.f32.mxu0 %v25_v52  ;;  %202 = vmatprep.mubr.f32.mxu1 %v41_v53 }
  0x28   :  { %163 = vmatmul.mubr.f32.gmra.mrb[2].mxu0 %v24_v54  ;;  %203 = vmatmul.mubr.f32.gmra.mrb[2].mxu1 %v40_v55 }
  0x29   :  { %167 = vmatprep.mubr.f32.mxu0 %v27_v56  ;;  %207 = vmatprep.mubr.f32.mxu1 %v43_v57 }
  0x2c   :  { %168 = vmatmul.mubr.f32.gmra.mrb[4].mxu0 %v26_v58  ;;  %208 = vmatmul.mubr.f32.gmra.mrb[4].mxu1 %v42_v59 }
  0x2d   :  { %172 = vmatprep.mubr.f32.mxu0 %v29_v60  ;;  %212 = vmatprep.mubr.f32.mxu1 %v45_v61 }
  0x30   :  { %173 = vmatmul.mubr.f32.gmra.mrb[6].mxu0 %v28_v62  ;;  %213 = vmatmul.mubr.f32.gmra.mrb[6].mxu1 %v44_v63 }
  0x31   :  { %177 = vmatprep.mubr.f32.mxu0 %v31_v0  ;;  %217 = vmatprep.mubr.f32.mxu1 %v47_v1 }
  0x34   :  { %178 = vmatmul.mubr.f32.gmra.mrb[8].mxu0 %v30_v2  ;;  %218 = vmatmul.mubr.f32.gmra.mrb[8].mxu1 %v46_v3 }
  0x35   :  { %182 = vmatprep.mubr.f32.mxu0 %v33_v4  ;;  %222 = vmatprep.mubr.f32.mxu1 %v49_v5 }
  0x38   :  { %183 = vmatmul.mubr.f32.gmra.mrb[10].mxu0 %v32_v6  ;;  %223 = vmatmul.mubr.f32.gmra.mrb[10].mxu1 %v48_v7 }
  0x39   :  { %187 = vmatprep.mubr.f32.mxu0 %v35_v8  ;;  %227 = vmatprep.mubr.f32.mxu1 %v51_v9 }
  0x3c   :  { %188 = vmatmul.mubr.f32.gmra.mrb[12].mxu0 %v34_v10  ;;  %228 = vmatmul.mubr.f32.gmra.mrb[12].mxu1 %v50_v11 }
  0x3d   :  { %192 = vmatprep.mubr.f32.mxu0 %v37_v12  ;;  %232 = vmatprep.mubr.f32.mxu1 %v53_v13 }
  0x40   :  { %193 = vmatmul.mubr.f32.gmra.mrb[14].mxu0 %v36_v14  ;;  %233 = vmatmul.mubr.f32.gmra.mrb[14].mxu1 %v52_v15 }
  0xf7   :  { %v631_v18 = vpop.f32.mrb[0].mxu0  ;;  %v655_v19 = vpop.f32.mrb[0].mxu1 }
  0xf8   :  { %v632_v21 = vpop.f32.mrb[1].mxu0  ;;  %v656_v22 = vpop.f32.mrb[1].mxu1 }
  0xf9   :  { %v633_v23 = vadd.f32 %v632_v21, %v631_v18  ;;  %v657_v24 = vadd.f32 %v656_v22, %v655_v19 }
  0xfb   :  { %v160_v25 = vadd.f32 %v633_v23, %v1023_v20  ;;  %v634_v26 = vpop.f32.mrb[2].mxu0  ;;  %v658_v27 = vpop.f32.mrb[2].mxu1  ;;  %v200_v54 = vadd.f32 %v657_v24, %v1023_v20 }
  0xfc   :  { %v635_v28 = vpop.f32.mrb[3].mxu0  ;;  %v659_v30 = vpop.f32.mrb[3].mxu1 }
  0xfd   :  { %v238_v31 = vmax.f32 %v160_v25, 0.0  ;;  %v636_v32 = vadd.f32 %v635_v28, %v634_v26  ;;  %v660_v33 = vadd.f32 %v659_v30, %v658_v27  ;;  %v246_v2 = vmax.f32 %v200_v54, 0.0 }
  0xff   :  { %v165_v34 = vadd.f32 %v636_v32, %v1023_v20  ;;  %v637_v35 = vpop.f32.mrb[4].mxu0  ;;  %v261_v36 = vmul.f32 %v1029_v29, %v238_v31  ;;  %v661_v37 = vpop.f32.mrb[4].mxu1  ;;  %v205_v7 = vadd.f32 %v660_v33, %v1023_v20  ;;  %v269_v16 = vmul.f32 %v1029_v29, %v246_v2 }
 0x100   :  { %v638_v38 = vpop.f32.mrb[5].mxu0  ;;  %v662_v39 = vpop.f32.mrb[5].mxu1 }
 0x101   :  { %v239_v40 = vmax.f32 %v165_v34, 0.0  ;;  %v639_v41 = vadd.f32 %v638_v38, %v637_v35  ;;  %v278_v42 = vsel %vm277_vm0, %v261_v36, 0.0  ;;  %v663_v43 = vadd.f32 %v662_v39, %v661_v37 }
 0x102   :  { %279 = vadd.xlane.f32.xlu0 %v278_v42  ;;  %v247_v19 = vmax.f32 %v205_v7, 0.0  ;;  %v302_v31 = vsel %vm277_vm0, %v269_v16, 0.0 }
 0x103   :  { %v170_v44 = vadd.f32 %v639_v41, %v1023_v20  ;;  %v640_v45 = vpop.f32.mrb[6].mxu0  ;;  %v262_v46 = vmul.f32 %v1029_v29, %v239_v40  ;;  %v664_v47 = vpop.f32.mrb[6].mxu1  ;;  %v210_v22 = vadd.f32 %v663_v43, %v1023_v20 }
 0x104   :  { %v641_v48 = vpop.f32.mrb[7].mxu0  ;;  %v665_v49 = vpop.f32.mrb[7].mxu1  ;;  %v270_v36 = vmul.f32 %v1029_v29, %v247_v19 }
 0x105   :  { %v240_v50 = vmax.f32 %v170_v44, 0.0  ;;  %v642_v51 = vadd.f32 %v641_v48, %v640_v45  ;;  %v281_v52 = vsel %vm277_vm0, %v262_v46, 0.0  ;;  %v666_v53 = vadd.f32 %v665_v49, %v664_v47 }
 0x106   :  { %282 = vadd.xlane.f32.xlu0 %v281_v52  ;;  %v248_v33 = vmax.f32 %v210_v22, 0.0  ;;  %v305_v45 = vsel %vm277_vm0, %v270_v36, 0.0 }
 0x107   :  { %v175_v55 = vadd.f32 %v642_v51, %v1023_v20  ;;  %v643_v56 = vpop.f32.mrb[8].mxu0  ;;  %v263_v57 = vmul.f32 %v1029_v29, %v240_v50  ;;  %v215_v58 = vadd.f32 %v666_v53, %v1023_v20  ;;  %v667_v59 = vpop.f32.mrb[8].mxu1 }
 0x108   :  { %v644_v60 = vpop.f32.mrb[9].mxu0  ;;  %v668_v61 = vpop.f32.mrb[9].mxu1  ;;  %v271_v47 = vmul.f32 %v1029_v29, %v248_v33 }
 0x109   :  { %v241_v62 = vmax.f32 %v175_v55, 0.0  ;;  %v645_v63 = vadd.f32 %v644_v60, %v643_v56  ;;  %v284_v0 = vsel %vm277_vm0, %v263_v57, 0.0  ;;  %v249_v1 = vmax.f32 %v215_v58, 0.0  ;;  %v326_v60 = vld [vmem:[#allocation2] sm:$0x1] }
 0x10a   :  { %285 = vadd.xlane.f32.xlu1 %v284_v0  ;;  %v669_v3 = vadd.f32 %v668_v61, %v667_v59  ;;  %v308_v49 = vsel %vm277_vm0, %v271_v47, 0.0 }
 0x10b   :  { %v180_v4 = vadd.f32 %v645_v63, %v1023_v20  ;;  %v646_v5 = vpop.f32.mrb[10].mxu0  ;;  %v264_v6 = vmul.f32 %v1029_v29, %v241_v62  ;;  %v670_v8 = vpop.f32.mrb[10].mxu1  ;;  %v272_v9 = vmul.f32 %v1029_v29, %v249_v1 }
 0x10c   :  { %v647_v10 = vpop.f32.mrb[11].mxu0  ;;  %v671_v11 = vpop.f32.mrb[11].mxu1  ;;  %v220_v35 = vadd.f32 %v669_v3, %v1023_v20 }
 0x10d   :  { %v242_v12 = vmax.f32 %v180_v4, 0.0  ;;  %v648_v13 = vadd.f32 %v647_v10, %v646_v5  ;;  %v287_v14 = vsel %vm277_vm0, %v264_v6, 0.0  ;;  %v672_v15 = vadd.f32 %v671_v11, %v670_v8 }
 0x10e   :  { %288 = vadd.xlane.f32.xlu1 %v287_v14  ;;  %v1049_v17 = vsel %vm277_vm0, %v272_v9, 0.0  ;;  %v250_v44 = vmax.f32 %v220_v35, 0.0 }
 0x10f   :  { %v185_v18 = vadd.f32 %v648_v13, %v1023_v20  ;;  %v265_v21 = vmul.f32 %v1029_v29, %v242_v12  ;;  %v649_v23 = vpop.f32.mrb[12].mxu0  ;;  %v673_v24 = vpop.f32.mrb[12].mxu1  ;;  %v225_v46 = vadd.f32 %v672_v15, %v1023_v20  ;;  %v332_v12 = vlaneseq }
 0x110   :  { %v650_v25 = vpop.f32.mrb[13].mxu0  ;;  %v674_v26 = vpop.f32.mrb[13].mxu1  ;;  %v273_v51 = vmul.f32 %v1029_v29, %v250_v44 }
 0x111   :  { %v243_v27 = vmax.f32 %v185_v18, 0.0  ;;  %v290_v28 = vsel %vm277_vm0, %v265_v21, 0.0  ;;  %v651_v30 = vadd.f32 %v650_v25, %v649_v23  ;;  %v675_v32 = vadd.f32 %v674_v26, %v673_v24 }
 0x112   :  { %291 = vadd.xlane.f32.xlu0 %v290_v28  ;;  %v251_v48 = vmax.f32 %v225_v46, 0.0  ;;  %v314_v53 = vsel %vm277_vm0, %v273_v51, 0.0  ;;  %v1081_v15 = vshrl.u32 %v332_v12, 7 }
 0x113   :  { %v266_v34 = vmul.f32 %v1029_v29, %v243_v27  ;;  %v652_v37 = vpop.f32.mrb[14].mxu0  ;;  %v676_v38 = vpop.f32.mrb[14].mxu1  ;;  %v190_v50 = vadd.f32 %v651_v30, %v1023_v20  ;;  %v230_v58 = vadd.f32 %v675_v32, %v1023_v20 }
 0x114   :  { %v653_v39 = vpop.f32.mrb[15].mxu0  ;;  %v677_v40 = vpop.f32.mrb[15].mxu1  ;;  %v274_v55 = vmul.f32 %v1029_v29, %v251_v48 }
 0x115   :  { %v293_v41 = vsel %vm277_vm0, %v266_v34, 0.0  ;;  %v654_v42 = vadd.f32 %v653_v39, %v652_v37  ;;  %v678_v43 = vadd.f32 %v677_v40, %v676_v38  ;;  %v244_v52 = vmax.f32 %v190_v50, 0.0 }
 0x116   :  { %294 = vadd.xlane.f32.xlu1 %v293_v41  ;;  %303 = vadd.xlane.f32.xlu0 %v302_v31  ;;  %v317_v57 = vsel %vm277_vm0, %v274_v55, 0.0  ;;  %v252_v61 = vmax.f32 %v230_v58, 0.0 }
 0x117   :  { %v195_v54 = vadd.f32 %v654_v42, %v1023_v20  ;;  %v267_v59 = vmul.f32 %v1029_v29, %v244_v52  ;;  %v235_v63 = vadd.f32 %v678_v43, %v1023_v20 }
 0x118   :  { %v275_v3 = vmul.f32 %v1029_v29, %v252_v61 }
 0x119   :  { %v245_v56 = vmax.f32 %v195_v54, 0.0  ;;  %v296_v62 = vsel %vm277_vm0, %v267_v59, 0.0  ;;  %v253_v1 = vmax.f32 %v235_v63, 0.0 }
 0x11a   :  { %306 = vadd.xlane.f32.xlu0 %v305_v45  ;;  %v320_v4 = vsel %vm277_vm0, %v275_v3, 0.0 }
 0x11b   :  { %v268_v0 = vmul.f32 %v1029_v29, %v245_v56  ;;  %v276_v5 = vmul.f32 %v1029_v29, %v253_v1  ;;  %v334_v29 = vsub.s32 0, %v1081_v15  ;;  %v1099_v56 = vand.u32 127, %v332_v12 }
 0x11d   :  { %v299_v2 = vsel %vm277_vm0, %v268_v0, 0.0  ;;  %v323_v6 = vsel %vm277_vm0, %v276_v5, 0.0  ;;  %v470_v3 = vadd.s32 4294967288, %v1099_v56 }
 0x11e   :  { %309 = vadd.xlane.f32.xlu0 %v308_v49 }
 0x122   :  { %315 = vadd.xlane.f32.xlu0 %v314_v53 }
 0x126   :  { %318 = vadd.xlane.f32.xlu0 %v317_v57 }
 0x127   :  { %329 = vperm.xlu1 %728, %v326_v60  }
 0x12a   :  { %297 = vadd.xlane.f32.xlu0 %v296_v62 }
 0x12e   :  { %300 = vadd.xlane.f32.xlu0 %v299_v2 }
 0x132   :  { %321 = vadd.xlane.f32.xlu0 %v320_v4 }
 0x136   :  { %324 = vadd.xlane.f32.xlu0 %v323_v6 }
 0x14b   :  { %312 = vadd.xlane.f32.xlu1 %v1049_v17 }
 0x18f   :  { %v280_v20 = vpop.xlane.xlu0 %279 }
 0x193   :  { %v283_v7 = vpop.xlane.xlu0 %282 }
 0x197   :  { %v286_v8 = vpop.xlane.xlu1 %285 }
 0x19b   :  { %v289_v10 = vpop.xlane.xlu1 %288 }
 0x19f   :  { %v292_v9 = vpop.xlane.xlu0 %291 }
 0x1a3   :  { %v304_v11 = vpop.xlane.xlu0 %303  ;;  %v295_v13 = vpop.xlane.xlu1 %294 }
 0x1a7   :  { %v307_v14 = vpop.xlane.xlu0 %306  ;;  %v330_v18 = vpop.permute.xlu1 %329 }
 0x1a8   :  { %v1084_v21 = vrot.slane %v330_v18, %v334_v29 }
 0x1aa   :  { %v336_v17 = vadd.f32 %v1084_v21, %v280_v20  ;;  %v337_v23 = vadd.f32 %v1084_v21, %v283_v7  ;;  %v338_v24 = vadd.f32 %v1084_v21, %v286_v8  ;;  %v339_v30 = vadd.f32 %v1084_v21, %v289_v10 }
 0x1ab   :  { %v310_v16 = vpop.xlane.xlu0 %309  ;;  %v340_v31 = vadd.f32 %v1084_v21, %v292_v9  ;;  %v341_v32 = vadd.f32 %v1084_v21, %v295_v13  ;;  %v344_v43 = vadd.f32 %v1084_v21, %v304_v11  ;;  %v345_v47 = vadd.f32 %v1084_v21, %v307_v14 }
 0x1ac   :  { %v583_v25 = vmul.f32 -1.442695, %v336_v17  ;;  %v584_v26 = vmul.f32 -1.442695, %v337_v23  ;;  %v585_v28 = vmul.f32 -1.442695, %v338_v24  ;;  %v346_v49 = vadd.f32 %v1084_v21, %v310_v16 }
 0x1ad   :  { %v586_v34 = vmul.f32 -1.442695, %v339_v30  ;;  %v587_v35 = vmul.f32 -1.442695, %v340_v31  ;;  %v588_v37 = vmul.f32 -1.442695, %v341_v32  ;;  %v468_v10 = vsub.s32 %v1099_v56, %v1081_v15 }
 0x1ae   :  { %730 = vpow2.f32 %v583_v25  ;;  %v591_v51 = vmul.f32 -1.442695, %v344_v43  ;;  %v592_v54 = vmul.f32 -1.442695, %v345_v47  ;;  %v593_v57 = vmul.f32 -1.442695, %v346_v49 }
 0x1af   :  { %v316_v19 = vpop.xlane.xlu0 %315  ;;  %732 = vpow2.f32 %v584_v26  ;;  %v477_v7 = vadd.s32 4294967280, %v1099_v56  ;;  %v473_v11 = vsub.s32 %v470_v3, %v1081_v15 }
 0x1b0   :  { %734 = vpow2.f32 %v585_v28  ;;  %v348_v50 = vadd.f32 %v1084_v21, %v316_v19 }
 0x1b1   :  { %736 = vpow2.f32 %v586_v34  ;;  %v480_v19 = vsub.s32 %v477_v7, %v1081_v15 }
 0x1b2   :  { %738 = vpow2.f32 %v587_v35  ;;  %v595_v60 = vmul.f32 -1.442695, %v348_v50 }
 0x1b3   :  { %v319_v22 = vpop.xlane.xlu0 %318  ;;  %740 = vpow2.f32 %v588_v37  ;;  %v498_v37 = vadd.s32 4294967256, %v1099_v56 }
 0x1b4   :  { %v349_v52 = vadd.f32 %v1084_v21, %v319_v22  ;;  %v484_v22 = vadd.s32 4294967272, %v1099_v56 }
 0x1b5   :  { %v501_v49 = vsub.s32 %v498_v37, %v1081_v15 }
 0x1b6   :  { %v596_v62 = vmul.f32 -1.442695, %v349_v52  ;;  %v487_v34 = vsub.s32 %v484_v22, %v1081_v15 }
 0x1b7   :  { %v298_v27 = vpop.xlane.xlu0 %297 }
 0x1b8   :  { %v342_v36 = vadd.f32 %v1084_v21, %v298_v27  ;;  %v731_v39 = vpop.eup %730 }
 0x1b9   :  { %v733_v41 = vpop.eup %732  ;;  %v400_v44 = vadd.f32 1.0, %v731_v39 }
 0x1ba   :  { %v589_v40 = vmul.f32 -1.442695, %v342_v36  ;;  %v735_v46 = vpop.eup %734  ;;  %v401_v48 = vadd.f32 1.0, %v733_v41 }
 0x1bb   :  { %v301_v33 = vpop.xlane.xlu0 %300  ;;  %v402_v53 = vadd.f32 1.0, %v735_v46  ;;  %v737_v55 = vpop.eup %736 }
 0x1bc   :  { %v343_v38 = vadd.f32 %v1084_v21, %v301_v33  ;;  %742 = vpow2.f32 %v589_v40  ;;  %v739_v59 = vpop.eup %738  ;;  %v403_v0 = vadd.f32 1.0, %v737_v55  ;;  %v512_v40 = vadd.s32 4294967240, %v1099_v56 }
 0x1bd   :  { %v741_v61 = vpop.eup %740  ;;  %v404_v2 = vadd.f32 1.0, %v739_v59 }
 0x1be   :  { %v590_v42 = vmul.f32 -1.442695, %v343_v38  ;;  %v405_v5 = vadd.f32 1.0, %v741_v61  ;;  %v505_v38 = vadd.s32 4294967248, %v1099_v56 }
 0x1bf   :  { %v322_v45 = vpop.xlane.xlu0 %321 }
 0x1c0   :  { %744 = vpow2.f32 %v590_v42  ;;  %v350_v63 = vadd.f32 %v1084_v21, %v322_v45  ;;  %v508_v50 = vsub.s32 %v505_v38, %v1081_v15 }
 0x1c1   :  { %746 = vrcp.f32 %v400_v44 }
 0x1c2   :  { %748 = vrcp.f32 %v401_v48  ;;  %v597_v20 = vmul.f32 -1.442695, %v350_v63 }
 0x1c3   :  { %v325_v58 = vpop.xlane.xlu0 %324  ;;  %750 = vpow2.f32 %v591_v51 }
 0x1c4   :  { %752 = vrcp.f32 %v402_v53  ;;  %v351_v1 = vadd.f32 %v1084_v21, %v325_v58  ;;  %v519_v58 = vadd.s32 4294967232, %v1099_v56 }
 0x1c5   :  { %754 = vpow2.f32 %v592_v54  ;;  %v515_v54 = vsub.s32 %v512_v40, %v1081_v15 }
 0x1c6   :  { %756 = vpow2.f32 %v593_v57  ;;  %v743_v4 = vpop.eup %742  ;;  %v598_v8 = vmul.f32 -1.442695, %v351_v1 }
 0x1c7   :  { %758 = vpow2.f32 %v595_v60  ;;  %v406_v12 = vadd.f32 1.0, %v743_v4  ;;  %v526_v60 = vadd.s32 4294967224, %v1099_v56  ;;  %v522_v4 = vsub.s32 %v519_v58, %v1081_v15 }
 0x1c8   :  { %760 = vpow2.f32 %v596_v62 }
 0x1c9   :  { %762 = vrcp.f32 %v403_v0 }
 0x1ca   :  { %v745_v6 = vpop.eup %744  ;;  %764 = vrcp.f32 %v404_v2 }
 0x1cb   :  { %v747_v9 = vpop.eup %746  ;;  %766 = vrcp.f32 %v405_v5  ;;  %v407_v14 = vadd.f32 1.0, %v745_v6 }
 0x1cc   :  { %v749_v13 = vpop.eup %748  ;;  %768 = vpow2.f32 %v597_v20  ;;  %v469_v23 = vrot.slane %v747_v9, %v468_v10  ;;  %v533_v20 = vadd.s32 4294967216, %v1099_v56  ;;  %v540_v10 = vadd.s32 4294967208, %v1099_v56 }
 0x1cd   :  { %v751_v18 = vpop.eup %750  ;;  %770 = vpow2.f32 %v598_v8  ;;  %v474_v24 = vrot.slane %v749_v13, %v473_v11  ;;  %v529_v8 = vsub.s32 %v526_v60, %v1081_v15 }
 0x1ce   :  { %v753_v17 = vpop.eup %752  ;;  %772 = vrcp.f32 %v406_v12  ;;  %v408_v28 = vadd.f32 1.0, %v751_v18  ;;  %v547_v12 = vadd.s32 4294967200, %v1099_v56 }
 0x1cf   :  { %v755_v26 = vpop.eup %754  ;;  %774 = vrcp.f32 %v407_v14  ;;  %v481_v31 = vrot.slane %v753_v17, %v480_v19  ;;  %v476_v33 = vsel %vm475_vm1, %v474_v24, %v469_v23  ;;  %v554_v14 = vadd.s32 4294967192, %v1099_v56 }
 0x1d0   :  { %v757_v27 = vpop.eup %756  ;;  %v409_v36 = vadd.f32 1.0, %v755_v26  ;;  %v561_v19 = vadd.s32 4294967184, %v1099_v56  ;;  %v568_v23 = vadd.s32 4294967176, %v1099_v56  ;;  %v543_v24 = vsub.s32 %v540_v10, %v1081_v15 }
 0x1d1   :  { %v759_v30 = vpop.eup %758  ;;  %v410_v42 = vadd.f32 1.0, %v757_v27  ;;  %v483_v43 = vsel %vm482_vm2, %v481_v31, %v476_v33  ;;  %v557_v27 = vsub.s32 %v554_v14, %v1081_v15 }
 0x1d2   :  { %v761_v32 = vpop.eup %760  ;;  %v412_v46 = vadd.f32 1.0, %v759_v30  ;;  %v571_v33 = vsub.s32 %v568_v23, %v1081_v15 }
 0x1d3   :  { %v763_v35 = vpop.eup %762  ;;  %v413_v52 = vadd.f32 1.0, %v761_v32 }
 0x1d4   :  { %v765_v39 = vpop.eup %764  ;;  %v488_v47 = vrot.slane %v763_v35, %v487_v34 }
 0x1d5   :  { %v767_v41 = vpop.eup %766 }
 0x1d6   :  { %v769_v45 = vpop.eup %768  ;;  %v490_v53 = vsel %vm489_vm3, %v488_v47, %v483_v43  ;;  %v502_v2 = vrot.slane %v767_v41, %v501_v49 }
 0x1d7   :  { %v771_v48 = vpop.eup %770  ;;  %v414_v61 = vadd.f32 1.0, %v769_v45 }
 0x1d8   :  { %v313_v16 = vpop.xlane.xlu1 %312  ;;  %v773_v51 = vpop.eup %772  ;;  %v415_v0 = vadd.f32 1.0, %v771_v48 }
 0x1d9   :  { %v347_v29 = vadd.f32 %v1084_v21, %v313_v16  ;;  %v491_v21 = vadd.s32 4294967264, %v1099_v56  ;;  %v775_v55 = vpop.eup %774  ;;  %v509_v63 = vrot.slane %v773_v51, %v508_v50 }
 0x1da   :  { %v516_v3 = vrot.slane %v775_v55, %v515_v54 }
 0x1db   :  { %v594_v25 = vmul.f32 -1.442695, %v347_v29  ;;  %v494_v44 = vsub.s32 %v491_v21, %v1081_v15  ;;  %v536_v29 = vsub.s32 %v533_v20, %v1081_v15  ;;  %v564_v21 = vsub.s32 %v561_v19, %v1081_v15 }
 0x1dd   :  { %776 = vpow2.f32 %v594_v25  ;;  %v495_v57 = vrot.slane %v765_v39, %v494_v44  ;;  %v550_v25 = vsub.s32 %v547_v12, %v1081_v15 }
 0x1de   :  { %778 = vrcp.f32 %v408_v28 }
 0x1df   :  { %780 = vrcp.f32 %v409_v36  ;;  %v497_v62 = vsel %vm496_vm4, %v495_v57, %v490_v53 }
 0x1e0   :  { %782 = vrcp.f32 %v410_v42  ;;  %v504_v6 = vsel %vm503_vm5, %v502_v2, %v497_v62 }
 0x1e1   :  { %784 = vrcp.f32 %v412_v46  ;;  %v511_v7 = vsel %vm510_vm6, %v509_v63, %v504_v6 }
 0x1e2   :  { %786 = vrcp.f32 %v413_v52  ;;  %v518_v9 = vsel %vm517_vm7, %v516_v3, %v511_v7 }
 0x1e7   :  { %v777_v59 = vpop.eup %776 }
 0x1e8   :  { %v411_v1 = vadd.f32 1.0, %v777_v59  ;;  %v779_v5 = vpop.eup %778 }
 0x1e9   :  { %v781_v11 = vpop.eup %780  ;;  %v523_v13 = vrot.slane %v779_v5, %v522_v4 }
 0x1ea   :  { %788 = vrcp.f32 %v411_v1  ;;  %v783_v16 = vpop.eup %782  ;;  %v530_v17 = vrot.slane %v781_v11, %v529_v8 }
 0x1eb   :  { %790 = vrcp.f32 %v414_v61  ;;  %v525_v18 = vsel %vm524_vm8, %v523_v13, %v518_v9  ;;  %v785_v22 = vpop.eup %784  ;;  %v537_v31 = vrot.slane %v783_v16, %v536_v29 }
 0x1ec   :  { %792 = vrcp.f32 %v415_v0  ;;  %v787_v26 = vpop.eup %786  ;;  %v532_v28 = vsel %vm531_vm9, %v530_v17, %v525_v18  ;;  %v551_v35 = vrot.slane %v785_v22, %v550_v25 }
 0x1ed   :  { %v539_v36 = vsel %vm538_vm10, %v537_v31, %v532_v28  ;;  %v558_v37 = vrot.slane %v787_v26, %v557_v27 }
 0x1f4   :  { %v789_v30 = vpop.eup %788 }
 0x1f5   :  { %v791_v32 = vpop.eup %790  ;;  %v544_v34 = vrot.slane %v789_v30, %v543_v24 }
 0x1f6   :  { %v793_v56 = vpop.eup %792  ;;  %v565_v39 = vrot.slane %v791_v32, %v564_v21 }
 0x1f7   :  { %v546_v38 = vsel %vm545_vm11, %v544_v34, %v539_v36  ;;  %v572_v41 = vrot.slane %v793_v56, %v571_v33 }
 0x1f8   :  { %v553_v40 = vsel %vm552_vm12, %v551_v35, %v546_v38 }
 0x1f9   :  { %v560_v42 = vsel %vm559_vm13, %v558_v37, %v553_v40 }
 0x1fa   :  { %v567_v43 = vsel %vm566_vm14, %v565_v39, %v560_v42 }
 0x1fb   :  { %v574_v44 = vsel %vm573_vm15, %v572_v41, %v567_v43 }
 0x1fc   :  { %576 = vst [vmem:[%s1144_s5] sm:$0x1] %v574_v44 }

</bundles_post_ra>
